<compile_context>
chip_gen: v7x
topology: tpu7x:2x2x1
jax: 0.10.0
libtpu: 0.0.40
codegen_flags: <defaults>
</compile_context>

<pallas_src>
import functools

import jax
import jax.numpy as jnp
from jax.experimental import pallas as pl
from jax.experimental.pallas import tpu as pltpu

_LANE = 128
_SUBLANE = 8

_VMEM_BUDGET = 24 << 20       # total live-buffer budget (safe on v7x: 64 MiB / TC)
_VMEM_LIMIT_CAP = 48 << 20    # never request the whole physical VMEM
_MIN_BLOCK_ROWS = 512         # >= 256 KiB per f32 slab -> amortizes ~0.35 us/step
_MAX_BLOCK_ROWS = 8192        # <= 4 MiB per f32 slab


def _cdiv(a, b):
    return -(-a // b)


def _choose_block_rows(rows, t_factor):
    """Pick the row-tile size.

    t_factor = number of (rows, 128) f32 slabs per I/O block (T for the SNN
    path, 1 for the ANN path).  Live VMEM per row of block:
      2x double-buffered input + 2x double-buffered output (+ ~2 slabs of
      scratch/temporary headroom for the membrane etc.).
    """
    bytes_per_row = (4 * t_factor + 2) * _LANE * 4
    br_vmem = _VMEM_BUDGET // bytes_per_row
    # Keep roughly >= 8 row tiles so v7x's two TensorCores both get work, but
    # never shrink a slab below _MIN_BLOCK_ROWS (grid-step overhead).
    br_par = _cdiv(rows, 8)
    br = min(br_vmem, _MAX_BLOCK_ROWS, max(_MIN_BLOCK_ROWS, br_par))
    br = max(_SUBLANE, (br // _SUBLANE) * _SUBLANE)
    if br >= rows:
        return rows            # single full-extent block (valid even if rows % 8 != 0)
    return br                  # multiple of 8; ragged last block handled by cdiv grid


def _vmem_limit_bytes(block_rows, t_factor):
    io_block = t_factor * block_rows * _LANE * 4
    need = 4 * io_block + 2 * block_rows * _LANE * 4
    return int(min(max(need + (8 << 20), 16 << 20), _VMEM_LIMIT_CAP))


# ------------------------------- SNN path (T > 0) -------------------------------

def _if_snn_kernel(thresh_ref, x_ref, o_ref, *, T):
    # thresh_ref: (1, 1) f32 in SMEM  (scalar firing threshold, learned param)
    # x_ref:      (T, block_rows, 128) input currents for one row tile
    # o_ref:      (T, block_rows, 128) output spikes (scaled by threshold)
    thre = thresh_ref[0, 0]
    mem = jnp.full(x_ref.shape[1:], 0.5 * thre, dtype=jnp.float32)
    # T is a small static constant: a Python loop gives static indexing on the
    # leading (time) axis and keeps the membrane as a loop-carried value in
    # vregs/VMEM rather than a per-step scratch load + store.
    for t in range(T):
        mem = mem + x_ref[t].astype(jnp.float32)
        spike = jnp.where(mem >= thre, thre, jnp.float32(0.0))   # ZIF fwd * thre
        o_ref[t] = spike.astype(o_ref.dtype)
        mem = mem - spike


def structured_pruning_if_forward_snn(x, thresh, T, *, block_rows=None):
    """x: (T*B, C, H, W); thresh: scalar; returns (T*B, C, H, W)."""
    TB = x.shape[0]
    assert TB % T == 0, "leading dim must be divisible by T (ExpandTemporalDim)"
    N = int(x.size) // T

    pad = (-N) % _LANE
    x_flat = x.reshape(T, N)                 # ExpandTemporalDim layout (T-major), zero-copy
    if pad:
        # TODO(synk): non-lane-aligned shapes pay one pad + one slice HBM pass;
        # the common (numel % 128 == 0) case below is zero-copy.
        x_flat = jnp.pad(x_flat, ((0, 0), (0, pad)))
    n_lanes = N + pad
    rows = n_lanes // _LANE
    x3 = x_flat.reshape(T, rows, _LANE)      # lane-dense layout

    if block_rows is None:
        block_rows = _choose_block_rows(rows, T)
    grid = (_cdiv(rows, block_rows),)        # ragged last block handled by Pallas

    thresh_arr = jnp.asarray(thresh, dtype=jnp.float32).reshape(1, 1)

    out3 = pl.pallas_call(
        functools.partial(_if_snn_kernel, T=T),
        out_shape=jax.ShapeDtypeStruct((T, rows, _LANE), x.dtype),
        grid_spec=pltpu.PrefetchScalarGridSpec(
            num_scalar_prefetch=0,
            grid=grid,
            in_specs=[
                pl.BlockSpec(memory_space=pltpu.MemorySpace.SMEM),
                pl.BlockSpec((T, block_rows, _LANE), lambda r: (0, r, 0)),
            ],
            out_specs=pl.BlockSpec((T, block_rows, _LANE), lambda r: (0, r, 0)),
        ),
        compiler_params=pltpu.CompilerParams(
            dimension_semantics=("parallel",),
            vmem_limit_bytes=_vmem_limit_bytes(block_rows, T),
        ),
    )(thresh_arr, x3)

    out = out3.reshape(T, n_lanes)
    if pad:
        out = out[:, :N]
    # MergeTemporalDim: (T, B, C, H, W) -> (T*B, C, H, W)
    return out.reshape(x.shape)


# ------------------------------- ANN / QCFS path (T == 0) -------------------------------

def _qcfs_ann_kernel(thresh_ref, x_ref, o_ref, *, L):
    # thresh_ref: (1, 1) f32 in SMEM; x_ref / o_ref: (block_rows, 128)
    thre = thresh_ref[0, 0]
    x = x_ref[...].astype(jnp.float32)
    y = jnp.clip(x / thre, 0.0, 1.0)         # true divide: thresh is a learned parameter
    y = jnp.floor(y * L + 0.5) / L           # GradFloor forward == floor
    o_ref[...] = (y * thre).astype(o_ref.dtype)


def structured_pruning_if_forward_ann(x, thresh, L, *, block_rows=None):
    """x: (B, C, H, W); thresh scalar; L int."""
    orig_shape = x.shape
    N = int(x.size)
    pad = (-N) % _LANE
    x_flat = x.reshape(-1)
    if pad:
        x_flat = jnp.pad(x_flat, (0, pad))
    rows = (N + pad) // _LANE
    x2 = x_flat.reshape(rows, _LANE)

    if block_rows is None:
        block_rows = _choose_block_rows(rows, 1)
    grid = (_cdiv(rows, block_rows),)

    thresh_arr = jnp.asarray(thresh, dtype=jnp.float32).reshape(1, 1)

    out2 = pl.pallas_call(
        functools.partial(_qcfs_ann_kernel, L=float(L)),
        out_shape=jax.ShapeDtypeStruct((rows, _LANE), x.dtype),
        grid_spec=pltpu.PrefetchScalarGridSpec(
            num_scalar_prefetch=0,
            grid=grid,
            in_specs=[
                pl.BlockSpec(memory_space=pltpu.MemorySpace.SMEM),
                pl.BlockSpec((block_rows, _LANE), lambda r: (r, 0)),
            ],
            out_specs=pl.BlockSpec((block_rows, _LANE), lambda r: (r, 0)),
        ),
        compiler_params=pltpu.CompilerParams(
            dimension_semantics=("parallel",),
            vmem_limit_bytes=_vmem_limit_bytes(block_rows, 1),
        ),
    )(thresh_arr, x2)

    out = out2.reshape(-1)
    if pad:
        out = out[:N]
    return out.reshape(orig_shape)


# ------------------------------- pure-JAX references -------------------------------

def ref_snn(x, thresh, T):
    TB = x.shape[0]
    B = TB // T
    xr = x.reshape((T, B) + x.shape[1:])
    thre = jnp.float32(thresh)
    mem = jnp.full(xr.shape[1:], 0.5 * thre, dtype=jnp.float32)
    spikes = []
    for t in range(T):
        mem = mem + xr[t]
        spike = (mem - thre >= 0).astype(jnp.float32) * thre    # ZIF fwd * thre
        mem = mem - spike
        spikes.append(spike)
    return jnp.stack(spikes, 0).reshape(x.shape).astype(x.dtype)


def ref_ann(x, thresh, L):
    y = x / jnp.float32(thresh)
    y = jnp.clip(y, 0.0, 1.0)
    y = jnp.floor(y * L + 0.5) / L
    return (y * thresh).astype(x.dtype)


# ------------------------------- main -------------------------------

if __name__ == "__main__":
    key = jax.random.PRNGKey(0)
    keys = jax.random.split(key, 6)

    thresh = 8.0     # module defaults
    L = 8

    # ---- SNN mode (T > 0), lane-aligned zero-copy path ----
    T, B, C, H, W = 4, 2, 4, 16, 16
    x_snn = jax.random.uniform(keys[0], (T * B, C, H, W), dtype=jnp.float32) * (2.0 * thresh)
    y_snn = structured_pruning_if_forward_snn(x_snn, thresh, T)
    jax.block_until_ready(y_snn)
    assert y_snn.shape == (T * B, C, H, W)
    assert jnp.allclose(y_snn, ref_snn(x_snn, thresh, T), atol=1e-6, rtol=1e-6), \
        "SNN path mismatch"

    # ---- SNN mode, ragged last block (cdiv grid, forced small block_rows) ----
    T2, B2, C2, H2, W2 = 2, 1, 5, 16, 16        # N = 1280 -> rows = 10
    x_snn2 = jax.random.uniform(keys[1], (T2 * B2, C2, H2, W2), dtype=jnp.float32) * (2.0 * thresh)
    y_snn2 = structured_pruning_if_forward_snn(x_snn2, thresh, T2, block_rows=8)
    jax.block_until_ready(y_snn2)
    assert jnp.allclose(y_snn2, ref_snn(x_snn2, thresh, T2), atol=1e-6, rtol=1e-6), \
        "SNN ragged-block path mismatch"

    # ---- SNN mode, numel not a multiple of 128 (pad fallback) ----
    T3, B3, C3, H3, W3 = 4, 1, 3, 7, 5
    x_snn3 = jax.random.uniform(keys[2], (T3 * B3, C3, H3, W3), dtype=jnp.float32) * (2.0 * thresh)
    y_snn3 = structured_pruning_if_forward_snn(x_snn3, thresh, T3)
    jax.block_until_ready(y_snn3)
    assert jnp.allclose(y_snn3, ref_snn(x_snn3, thresh, T3), atol=1e-6, rtol=1e-6), \
        "SNN padded path mismatch"

    # ---- ANN / QCFS mode (T == 0), lane-aligned ----
    x_ann = jax.random.uniform(keys[3], (2, 4, 16, 16), dtype=jnp.float32) * (1.5 * thresh)
    y_ann = structured_pruning_if_forward_ann(x_ann, thresh, L)
    jax.block_until_ready(y_ann)
    assert jnp.allclose(y_ann, ref_ann(x_ann, thresh, L), atol=1e-6, rtol=1e-6), \
        "ANN path mismatch"

    # ---- ANN mode, ragged last block (forced small block_rows) ----
    x_ann2 = jax.random.uniform(keys[4], (1, 5, 16, 16), dtype=jnp.float32) * (1.5 * thresh)
    y_ann2 = structured_pruning_if_forward_ann(x_ann2, thresh, L, block_rows=8)
    jax.block_until_ready(y_ann2)
    assert jnp.allclose(y_ann2, ref_ann(x_ann2, thresh, L), atol=1e-6, rtol=1e-6), \
        "ANN ragged-block path mismatch"

    # ---- ANN mode, numel not a multiple of 128 (pad fallback) ----
    x_ann3 = jax.random.uniform(keys[5], (2, 3, 10, 10), dtype=jnp.float32) * (1.5 * thresh)
    y_ann3 = structured_pruning_if_forward_ann(x_ann3, thresh, L)
    jax.block_until_ready(y_ann3)
    assert jnp.allclose(y_ann3, ref_ann(x_ann3, thresh, L), atol=1e-6, rtol=1e-6), \
        "ANN padded path mismatch"

    print("KERNEL_OK")
</pallas_src>

<mosaic_0001>
module attributes {stable_mosaic.version = 11 : i64} {
  func.func @_if_snn_kernel(%arg0: i32, %arg1: memref<1x1xf32, #tpu.memory_space<smem>>, %arg2: memref<4x16x128xf32, #tpu.memory_space<vmem>>, %arg3: memref<4x16x128xf32, #tpu.memory_space<vmem>>) attributes {dimension_semantics = [#tpu.dimension_semantics<parallel>], iteration_bounds = array<i64: 1>, scalar_prefetch = 0 : i64, scratch_operands = 0 : i64, tpu.core_type = #tpu.core_type<tc>, window_params = [{transform_indices = @transform_0, window_bounds = array<i64: 1, 1>}, {transform_indices = @transform_1, window_bounds = array<i64: 4, 16, 128>}, {transform_indices = @transform_2, window_bounds = array<i64: 4, 16, 128>}]} {
    %c0 = arith.constant 0 : index
    %c0_0 = arith.constant 0 : index
    %0 = memref.load %arg1[%c0, %c0_0] : memref<1x1xf32, #tpu.memory_space<smem>>
    %cst = arith.constant 5.000000e-01 : f32
    %1 = arith.mulf %cst, %0 : f32
    %2 = vector.broadcast %1 : f32 to vector<16x128xf32>
    %c0_1 = arith.constant 0 : index
    %c0_2 = arith.constant 0 : index
    %c0_3 = arith.constant 0 : index
    %3 = vector.load %arg2[%c0_1, %c0_2, %c0_3] : memref<4x16x128xf32, #tpu.memory_space<vmem>>, vector<1x16x128xf32>
    %4 = vector.shape_cast %3 : vector<1x16x128xf32> to vector<16x128xf32>
    %5 = arith.addf %2, %4 : vector<16x128xf32>
    %6 = vector.broadcast %0 : f32 to vector<16x128xf32>
    %7 = arith.cmpf oge, %5, %6 : vector<16x128xf32>
    %cst_4 = arith.constant 0.000000e+00 : f32
    %8 = vector.broadcast %0 : f32 to vector<16x128xf32>
    %9 = vector.broadcast %cst_4 : f32 to vector<16x128xf32>
    %10 = arith.select %7, %8, %9 : vector<16x128xi1>, vector<16x128xf32>
    %c0_5 = arith.constant 0 : index
    %c0_6 = arith.constant 0 : index
    %c0_7 = arith.constant 0 : index
    %11 = vector.load %arg3[%c0_5, %c0_6, %c0_7] : memref<4x16x128xf32, #tpu.memory_space<vmem>>, vector<1x16x128xf32>
    %12 = vector.shape_cast %11 : vector<1x16x128xf32> to vector<16x128xf32>
    %13 = vector.shape_cast %10 : vector<16x128xf32> to vector<1x16x128xf32>
    tpu.vector_store %arg3[%c0_5, %c0_6, %c0_7], %13 {strides = array<i32>} : memref<4x16x128xf32, #tpu.memory_space<vmem>>, vector<1x16x128xf32>,
    %14 = arith.subf %5, %10 : vector<16x128xf32>
    %c1 = arith.constant 1 : index
    %c0_8 = arith.constant 0 : index
    %c0_9 = arith.constant 0 : index
    %15 = vector.load %arg2[%c1, %c0_8, %c0_9] : memref<4x16x128xf32, #tpu.memory_space<vmem>>, vector<1x16x128xf32>
    %16 = vector.shape_cast %15 : vector<1x16x128xf32> to vector<16x128xf32>
    %17 = arith.addf %14, %16 : vector<16x128xf32>
    %18 = vector.broadcast %0 : f32 to vector<16x128xf32>
    %19 = arith.cmpf oge, %17, %18 : vector<16x128xf32>
    %cst_10 = arith.constant 0.000000e+00 : f32
    %20 = vector.broadcast %0 : f32 to vector<16x128xf32>
    %21 = vector.broadcast %cst_10 : f32 to vector<16x128xf32>
    %22 = arith.select %19, %20, %21 : vector<16x128xi1>, vector<16x128xf32>
    %c1_11 = arith.constant 1 : index
    %c0_12 = arith.constant 0 : index
    %c0_13 = arith.constant 0 : index
    %23 = vector.load %arg3[%c1_11, %c0_12, %c0_13] : memref<4x16x128xf32, #tpu.memory_space<vmem>>, vector<1x16x128xf32>
    %24 = vector.shape_cast %23 : vector<1x16x128xf32> to vector<16x128xf32>
    %25 = vector.shape_cast %22 : vector<16x128xf32> to vector<1x16x128xf32>
    tpu.vector_store %arg3[%c1_11, %c0_12, %c0_13], %25 {strides = array<i32>} : memref<4x16x128xf32, #tpu.memory_space<vmem>>, vector<1x16x128xf32>,
    %26 = arith.subf %17, %22 : vector<16x128xf32>
    %c2 = arith.constant 2 : index
    %c0_14 = arith.constant 0 : index
    %c0_15 = arith.constant 0 : index
    %27 = vector.load %arg2[%c2, %c0_14, %c0_15] : memref<4x16x128xf32, #tpu.memory_space<vmem>>, vector<1x16x128xf32>
    %28 = vector.shape_cast %27 : vector<1x16x128xf32> to vector<16x128xf32>
    %29 = arith.addf %26, %28 : vector<16x128xf32>
    %30 = vector.broadcast %0 : f32 to vector<16x128xf32>
    %31 = arith.cmpf oge, %29, %30 : vector<16x128xf32>
    %cst_16 = arith.constant 0.000000e+00 : f32
    %32 = vector.broadcast %0 : f32 to vector<16x128xf32>
    %33 = vector.broadcast %cst_16 : f32 to vector<16x128xf32>
    %34 = arith.select %31, %32, %33 : vector<16x128xi1>, vector<16x128xf32>
    %c2_17 = arith.constant 2 : index
    %c0_18 = arith.constant 0 : index
    %c0_19 = arith.constant 0 : index
    %35 = vector.load %arg3[%c2_17, %c0_18, %c0_19] : memref<4x16x128xf32, #tpu.memory_space<vmem>>, vector<1x16x128xf32>
    %36 = vector.shape_cast %35 : vector<1x16x128xf32> to vector<16x128xf32>
    %37 = vector.shape_cast %34 : vector<16x128xf32> to vector<1x16x128xf32>
    tpu.vector_store %arg3[%c2_17, %c0_18, %c0_19], %37 {strides = array<i32>} : memref<4x16x128xf32, #tpu.memory_space<vmem>>, vector<1x16x128xf32>,
    %38 = arith.subf %29, %34 : vector<16x128xf32>
    %c3 = arith.constant 3 : index
    %c0_20 = arith.constant 0 : index
    %c0_21 = arith.constant 0 : index
    %39 = vector.load %arg2[%c3, %c0_20, %c0_21] : memref<4x16x128xf32, #tpu.memory_space<vmem>>, vector<1x16x128xf32>
    %40 = vector.shape_cast %39 : vector<1x16x128xf32> to vector<16x128xf32>
    %41 = arith.addf %38, %40 : vector<16x128xf32>
    %42 = vector.broadcast %0 : f32 to vector<16x128xf32>
    %43 = arith.cmpf oge, %41, %42 : vector<16x128xf32>
    %cst_22 = arith.constant 0.000000e+00 : f32
    %44 = vector.broadcast %0 : f32 to vector<16x128xf32>
    %45 = vector.broadcast %cst_22 : f32 to vector<16x128xf32>
    %46 = arith.select %43, %44, %45 : vector<16x128xi1>, vector<16x128xf32>
    %c3_23 = arith.constant 3 : index
    %c0_24 = arith.constant 0 : index
    %c0_25 = arith.constant 0 : index
    %47 = vector.load %arg3[%c3_23, %c0_24, %c0_25] : memref<4x16x128xf32, #tpu.memory_space<vmem>>, vector<1x16x128xf32>
    %48 = vector.shape_cast %47 : vector<1x16x128xf32> to vector<16x128xf32>
    %49 = vector.shape_cast %46 : vector<16x128xf32> to vector<1x16x128xf32>
    tpu.vector_store %arg3[%c3_23, %c0_24, %c0_25], %49 {strides = array<i32>} : memref<4x16x128xf32, #tpu.memory_space<vmem>>, vector<1x16x128xf32>,
    return
  }
  func.func @transform_0(%arg0: i32) -> (i32, i32) {
    %c0_i32 = arith.constant 0 : i32
    %c0_i32_0 = arith.constant 0 : i32
    %c0_i32_1 = arith.constant 0 : i32
    return %c0_i32, %c0_i32_0 : i32, i32
  }
  func.func @transform_1(%arg0: i32) -> (i32, i32, i32) {
    %c0_i32 = arith.constant 0 : i32
    %c0_i32_0 = arith.constant 0 : i32
    %c0_i32_1 = arith.constant 0 : i32
    return %c0_i32, %arg0, %c0_i32_0 : i32, i32, i32
  }
  func.func @transform_2(%arg0: i32) -> (i32, i32, i32) {
    %c0_i32 = arith.constant 0 : i32
    %c0_i32_0 = arith.constant 0 : i32
    %c0_i32_1 = arith.constant 0 : i32
    return %c0_i32, %arg0, %c0_i32_0 : i32, i32, i32
  }
}

</mosaic_0001>

<bundles_post_ra>
// kernel: tpu_custom_call.1
= control target key start
LH: loop header
LB: loop body
LE: loop exit
PB: predicated region body
PF: predicated region fallthrough
CT: control target
= control target key end

     0   :  { %8 = vsyncpa [#allocation4], 0  ;;  %s207_s0 = inlined_call_operand.<no memory space> [shape: f32[1,1], index: 0, kind: input, shape index: {}]   ;;  %s208_s1 = inlined_call_operand.hbm [shape: f32[4,16,128], index: 1, kind: input, shape index: {}]   ;;  %s209_s2 = inlined_call_operand.hbm [shape: f32[4,16,128], index: 2, kind: output, shape index: {}]  }
   0x1   :  { %9 = vsyncpa [#allocation5], 0  ;;  %s152_s9 = smov [#allocation3]   ;;  %s104_s13 = scalar_lea.hbm %s208_s1, 1024 }
   0x2   :  { %s17_s10 = sshll.u32 %s152_s9, 4  ;;  %p105_p0 = scmp.ne.s32.totalorder %s208_s1, %s104_s13  ;;  %s18_s10 = int_to_ptr.vmem [resolvable:$true] %s17_s10 }
   0x3   :  { %p108_p1 = scmp.lt.u32.totalorder %s104_s13, %s208_s1 }
   0x5   :  { %p110_p2 = pnand %p108_p1, %p105_p0 }
   0x7   :  { %113 = shalt.err (!%p110_p2)
}
   0x8   :  { %s114_s18 = scalar_lea.vmem %s18_s10, 1024  ;;  %p119_p4 = scmp.lt.s32.totalorder %s18_s10, %s18_s10 }
   0x9   :  { %p115_p3 = scmp.ne.s32.totalorder %s18_s10, %s114_s18  ;;  %p120_p5 = scmp.lt.s32.totalorder %s114_s18, %s114_s18 }
   0xb   :  { %p121_p6 = por %p120_p5, %p119_p4 }
   0xd   :  { %p122_p7 = pnand %p121_p6, %p115_p3 }
   0xf   :  { %125 = shalt.err (!%p122_p7)
}
  0x10   :  { %s153_s19 = smov 128   ;;  %s154_s20 = smov 8  }
  0x11   :  { %23 = dma.hbm_to_vmem [thread:$0]  %s208_s1, 1024, %s18_s10, [#allocation4], %s153_s19, %s153_s19, %s154_s20  }
  0x12   :  { %148 = dma.done.wait [#allocation4], 1024  }
  0x13   :  { %149 = vsyncadd [#allocation4], 4294966272  ;;  %s28_s25 = smul.f32 0.5, %s207_s0  ;;  %v30_v1 = vld [vmem:[#allocation3] sm:$0xff]  ;;  %v34_v2 = vstv %s207_s0  ;;  %v31_v3 = vld [vmem:[#allocation3 + $0x8] sm:$0xff]  ;;  %s155_s0 = smov [#allocation6]  }
  0x14   :  { %v44_v8 = vld [vmem:[#allocation3 + $0x10] sm:$0xff]  ;;  %v45_v9 = vld [vmem:[#allocation3 + $0x18] sm:$0xff]  ;;  %v58_v16 = vld [vmem:[#allocation3 + $0x20] sm:$0xff]  ;;  %s88_s1 = sshll.u32 %s155_s0, 4  ;;  %s89_s1 = int_to_ptr.vmem [resolvable:$true] %s88_s1 }
  0x15   :  { %v29_v0 = vstv %s28_s25  ;;  %v59_v17 = vld [vmem:[#allocation3 + $0x28] sm:$0xff]  ;;  %v72_v24 = vld [vmem:[#allocation3 + $0x30] sm:$0xff]  ;;  %v73_v25 = vld [vmem:[#allocation3 + $0x38] sm:$0xff]  ;;  %s126_s28 = scalar_lea.vmem %s89_s1, 1024  ;;  %p131_p9 = scmp.lt.s32.totalorder %s89_s1, %s89_s1 }
  0x16   :  { %v32_v4 = vadd.f32 %v30_v1, %v29_v0  ;;  %v33_v5 = vadd.f32 %v31_v3, %v29_v0  ;;  %p127_p8 = scmp.ne.s32.totalorder %s89_s1, %s126_s28  ;;  %p132_p10 = scmp.lt.s32.totalorder %s126_s28, %s126_s28 }
  0x18   :  { %vm35_vm0 = vcmp.ge.f32.partialorder %v32_v4, %v34_v2  ;;  %vm36_vm1 = vcmp.ge.f32.partialorder %v33_v5, %v34_v2  ;;  %p133_p11 = por %p132_p10, %p131_p9 }
  0x19   :  { %v37_v6 = vsel %vm35_vm0, %v34_v2, 0.0  ;;  %v38_v7 = vsel %vm36_vm1, %v34_v2, 0.0 }
  0x1a   :  { %39 = vst [vmem:[#allocation6] sm:$0xff] %v37_v6  ;;  %v41_v10 = vsub.f32 %v32_v4, %v37_v6  ;;  %40 = vst [vmem:[#allocation6 + $0x8] sm:$0xff] %v38_v7  ;;  %v42_v11 = vsub.f32 %v33_v5, %v38_v7  ;;  %p134_p12 = pnand %p133_p11, %p127_p8 }
  0x1c   :  { %v46_v12 = vadd.f32 %v44_v8, %v41_v10  ;;  %v47_v13 = vadd.f32 %v45_v9, %v42_v11 }
  0x1e   :  { %vm48_vm2 = vcmp.ge.f32.partialorder %v46_v12, %v34_v2  ;;  %vm49_vm3 = vcmp.ge.f32.partialorder %v47_v13, %v34_v2 }
  0x1f   :  { %v50_v14 = vsel %vm48_vm2, %v34_v2, 0.0  ;;  %v51_v15 = vsel %vm49_vm3, %v34_v2, 0.0 }
  0x20   :  { %53 = vst [vmem:[#allocation6 + $0x10] sm:$0xff] %v50_v14  ;;  %v55_v18 = vsub.f32 %v46_v12, %v50_v14  ;;  %54 = vst [vmem:[#allocation6 + $0x18] sm:$0xff] %v51_v15  ;;  %v56_v19 = vsub.f32 %v47_v13, %v51_v15 }
  0x22   :  { %v60_v20 = vadd.f32 %v58_v16, %v55_v18  ;;  %v61_v21 = vadd.f32 %v59_v17, %v56_v19 }
  0x24   :  { %vm62_vm4 = vcmp.ge.f32.partialorder %v60_v20, %v34_v2  ;;  %vm63_vm5 = vcmp.ge.f32.partialorder %v61_v21, %v34_v2 }
  0x25   :  { %v64_v22 = vsel %vm62_vm4, %v34_v2, 0.0  ;;  %v65_v23 = vsel %vm63_vm5, %v34_v2, 0.0 }
  0x26   :  { %67 = vst [vmem:[#allocation6 + $0x20] sm:$0xff] %v64_v22  ;;  %v69_v26 = vsub.f32 %v60_v20, %v64_v22  ;;  %68 = vst [vmem:[#allocation6 + $0x28] sm:$0xff] %v65_v23  ;;  %v70_v27 = vsub.f32 %v61_v21, %v65_v23 }
  0x28   :  { %v74_v28 = vadd.f32 %v72_v24, %v69_v26  ;;  %v75_v29 = vadd.f32 %v73_v25, %v70_v27 }
  0x2a   :  { %vm76_vm6 = vcmp.ge.f32.partialorder %v74_v28, %v34_v2  ;;  %vm77_vm7 = vcmp.ge.f32.partialorder %v75_v29, %v34_v2 }
  0x2b   :  { %v78_v30 = vsel %vm76_vm6, %v34_v2, 0.0  ;;  %v79_v31 = vsel %vm77_vm7, %v34_v2, 0.0 }
  0x2c   :  { %81 = vst [vmem:[#allocation6 + $0x30] sm:$0xff] %v78_v30  ;;  %82 = vst [vmem:[#allocation6 + $0x38] sm:$0xff] %v79_v31 }
  0x2d   :  { %137 = shalt.err (!%p134_p12)
}
  0x2e   :  { %s138_s3 = scalar_lea.hbm %s209_s2, 1024 }
  0x2f   :  { %p139_p13 = scmp.ne.s32.totalorder %s209_s2, %s138_s3  ;;  %p142_p0 = scmp.lt.u32.totalorder %s138_s3, %s209_s2 }
  0x31   :  { %p144_p1 = pnand %p142_p0, %p139_p13 }
  0x33   :  { %147 = shalt.err (!%p144_p1)
}
  0x34   :  { %94 = dma.vmem_to_hbm [thread:$0]  %s89_s1, 1024, %s209_s2, [#allocation5], %s153_s19, %s153_s19, %s154_s20  }
  0x35   :  { %150 = dma.done.wait [#allocation5], 1024  }
  0x36   :  { %151 = vsyncadd [#allocation5], 4294966272 }
  0x37   :  { %98 = vsyncpa [#allocation4], 1 }
  0x38   :  { %99 = vsyncpa [#allocation5], 1 }

</bundles_post_ra>
